<compile_context>
chip_gen: v7x
topology: tpu7x:2x2x1
jax: 0.10.0
libtpu: 0.0.40
codegen_flags: <defaults>
</compile_context>

<pallas_src>
import jax
import jax.numpy as jnp
from jax.experimental import pallas as pl
from jax.experimental.pallas import tpu as pltpu

H_PAD = 128  # hidden features 10 -> 128 (lane-dense hidden activations / weights)


def toy_mlp_kernel(x_ref, w1_ref, b1_ref, w2_ref, b2_ref, o_ref):
    # net1: (TB, 10) @ (10, 128) -> (TB, 128); f32 MXU accumulation.
    h = jnp.dot(x_ref[...], w1_ref[...], preferred_element_type=jnp.float32)
    # bias + ReLU on the VPU in f32 (v5e-safe, faithful to torch f32).
    h = jnp.maximum(h + b1_ref[...], 0.0)
    # net2: (TB, 128) @ (128, 5) -> (TB, 5); only the 5 real output lanes are
    # produced, so the HBM writeback stays narrow and contiguous.
    out = jnp.dot(h, w2_ref[...], preferred_element_type=jnp.float32)
    o_ref[...] = (out + b2_ref[...]).astype(o_ref.dtype)


def _round_up(n, m):
    return ((n + m - 1) // m) * m


def _choose_batch_tile(B, max_tb):
    """Balanced batch tile: large (amortize per-step overhead), multiple of 16,
    >=2 grid steps for moderate batches (v7x megacore), minimal ragged waste."""
    n_tiles = max(1, pl.cdiv(B, max_tb))
    if n_tiles == 1 and B > 256:
        n_tiles = 2  # give both v7x TensorCores a tile; harmless on v5e/v6e
    tb = _round_up(pl.cdiv(B, n_tiles), 16)
    return max(16, min(tb, max_tb))


def toy_model_forward(x, w1, b1, w2, b2, *, max_tb=2048):
    """Forward pass of ToyModel.

    x:  (B, 10) float32
    w1: (10, 10) float32  (stored (in, out), i.e. torch weight transposed)
    b1: (10,)    float32
    w2: (10, 5)  float32  (stored (in, out))
    b2: (5,)     float32
    returns (B, 5) float32
    """
    B, K = x.shape
    H = w1.shape[1]
    N = w2.shape[1]
    if B == 0:  # degenerate-batch guard
        return jnp.zeros((0, N), jnp.float32)

    x = x.astype(jnp.float32)

    # One-time padding of the tiny parameters only (hidden dim 10 -> 128).
    # Padded hidden lanes see x@0 + 0 -> relu -> 0 and multiply zero rows of
    # w2, so the math is identical to the unpadded reference.
    w1_p = jnp.zeros((K, H_PAD), jnp.float32).at[:, :H].set(w1.astype(jnp.float32))
    b1_p = jnp.zeros((1, H_PAD), jnp.float32).at[0, :H].set(b1.astype(jnp.float32))
    w2_p = jnp.zeros((H_PAD, N), jnp.float32).at[:H, :].set(w2.astype(jnp.float32))
    b2_p = b2.astype(jnp.float32).reshape(1, N)

    TB = _choose_batch_tile(B, max_tb)
    grid = (pl.cdiv(B, TB),)  # ragged last batch tile is masked by Pallas

    return pl.pallas_call(
        toy_mlp_kernel,
        out_shape=jax.ShapeDtypeStruct((B, N), jnp.float32),
        grid_spec=pltpu.PrefetchScalarGridSpec(
            num_scalar_prefetch=0,
            grid=grid,
            in_specs=[
                # x tile streams over the batch grid (last dim = full dim -> legal)
                pl.BlockSpec((TB, K), lambda i: (i, 0)),
                # weights / biases: constant index_map -> resident across grid
                pl.BlockSpec((K, H_PAD), lambda i: (0, 0)),
                pl.BlockSpec((1, H_PAD), lambda i: (0, 0)),
                pl.BlockSpec((H_PAD, N), lambda i: (0, 0)),
                pl.BlockSpec((1, N), lambda i: (0, 0)),
            ],
            # narrow (TB, 5) output block: contiguous HBM rows, no final slice
            out_specs=pl.BlockSpec((TB, N), lambda i: (i, 0)),
        ),
        compiler_params=pltpu.CompilerParams(
            dimension_semantics=("parallel",),  # v7x: shard batch over 2 TCs
        ),
    )(x, w1_p, b1_p, w2_p, b2_p)


if __name__ == "__main__":
    key = jax.random.PRNGKey(0)
    kx, k1, k2, k3, k4 = jax.random.split(key, 5)

    B = 20  # matches torch.randn(20, 10) in the DDP tutorial; exercises the ragged tile
    x = jax.random.normal(kx, (B, 10), jnp.float32)
    w1 = jax.random.normal(k1, (10, 10), jnp.float32) * 0.1  # (in=10, out=10)
    b1 = jax.random.normal(k2, (10,), jnp.float32) * 0.1
    w2 = jax.random.normal(k3, (10, 5), jnp.float32) * 0.1   # (in=10, out=5)
    b2 = jax.random.normal(k4, (5,), jnp.float32) * 0.1

    out = jax.block_until_ready(toy_model_forward(x, w1, b1, w2, b2))

    # Pure-JAX f32 reference of the same forward pass.
    ref = jnp.maximum(x @ w1 + b1[None, :], 0.0) @ w2 + b2[None, :]
    assert out.shape == (B, 5), out.shape
    assert jnp.allclose(out, ref, atol=1e-2, rtol=1e-2), (
        f"max abs err {jnp.max(jnp.abs(out - ref))}")

    print("KERNEL_OK")
</pallas_src>

<mosaic_0001>
module attributes {stable_mosaic.version = 11 : i64} {
  func.func @toy_mlp_kernel(%arg0: i32, %arg1: memref<32x10xf32, #tpu.memory_space<vmem>>, %arg2: memref<10x128xf32, #tpu.memory_space<vmem>>, %arg3: memref<1x128xf32, #tpu.memory_space<vmem>>, %arg4: memref<128x5xf32, #tpu.memory_space<vmem>>, %arg5: memref<1x5xf32, #tpu.memory_space<vmem>>, %arg6: memref<32x5xf32, #tpu.memory_space<vmem>>) attributes {dimension_semantics = [#tpu.dimension_semantics<parallel>], iteration_bounds = array<i64: 1>, scalar_prefetch = 0 : i64, scratch_operands = 0 : i64, tpu.core_type = #tpu.core_type<tc>, window_params = [{transform_indices = @transform_0, window_bounds = array<i64: 32, 10>}, {pipeline_mode = #tpu.pipeline_mode<synchronous>, transform_indices = @transform_1, window_bounds = array<i64: 10, 128>}, {pipeline_mode = #tpu.pipeline_mode<synchronous>, transform_indices = @transform_2, window_bounds = array<i64: 1, 128>}, {pipeline_mode = #tpu.pipeline_mode<synchronous>, transform_indices = @transform_3, window_bounds = array<i64: 128, 5>}, {pipeline_mode = #tpu.pipeline_mode<synchronous>, transform_indices = @transform_4, window_bounds = array<i64: 1, 5>}, {transform_indices = @transform_5, window_bounds = array<i64: 32, 5>}]} {
    %c0 = arith.constant 0 : index
    %c0_0 = arith.constant 0 : index
    %0 = vector.load %arg1[%c0, %c0_0] : memref<32x10xf32, #tpu.memory_space<vmem>>, vector<32x10xf32>
    %c0_1 = arith.constant 0 : index
    %c0_2 = arith.constant 0 : index
    %1 = vector.load %arg2[%c0_1, %c0_2] : memref<10x128xf32, #tpu.memory_space<vmem>>, vector<10x128xf32>
    %cst = arith.constant dense<0.000000e+00> : vector<32x128xf32>
    %2 = tpu.matmul %0, %1, %cst {dimension_numbers = #tpu.dot_dimension_numbers<[1], [0], [0], [1], [0, 0, 1, 1], [], []>} : vector<32x10xf32>, vector<10x128xf32>, vector<32x128xf32> -> vector<32x128xf32>
    %c0_3 = arith.constant 0 : index
    %c0_4 = arith.constant 0 : index
    %3 = vector.load %arg3[%c0_3, %c0_4] : memref<1x128xf32, #tpu.memory_space<vmem>>, vector<1x128xf32>
    %4 = vector.broadcast %3 : vector<1x128xf32> to vector<32x128xf32>
    %5 = arith.addf %2, %4 : vector<32x128xf32>
    %cst_5 = arith.constant 0.000000e+00 : f32
    %6 = vector.broadcast %cst_5 : f32 to vector<32x128xf32>
    %7 = arith.maximumf %5, %6 : vector<32x128xf32>
    %c0_6 = arith.constant 0 : index
    %c0_7 = arith.constant 0 : index
    %8 = vector.load %arg4[%c0_6, %c0_7] : memref<128x5xf32, #tpu.memory_space<vmem>>, vector<128x5xf32>
    %cst_8 = arith.constant dense<0.000000e+00> : vector<32x5xf32>
    %9 = tpu.matmul %7, %8, %cst_8 {dimension_numbers = #tpu.dot_dimension_numbers<[1], [0], [0], [1], [0, 0, 1, 1], [], []>} : vector<32x128xf32>, vector<128x5xf32>, vector<32x5xf32> -> vector<32x5xf32>
    %c0_9 = arith.constant 0 : index
    %c0_10 = arith.constant 0 : index
    %10 = vector.load %arg5[%c0_9, %c0_10] : memref<1x5xf32, #tpu.memory_space<vmem>>, vector<1x5xf32>
    %11 = vector.broadcast %10 : vector<1x5xf32> to vector<32x5xf32>
    %12 = arith.addf %9, %11 : vector<32x5xf32>
    %c0_11 = arith.constant 0 : index
    %c0_12 = arith.constant 0 : index
    %13 = vector.load %arg6[%c0_11, %c0_12] : memref<32x5xf32, #tpu.memory_space<vmem>>, vector<32x5xf32>
    tpu.vector_store %arg6[%c0_11, %c0_12], %12 {strides = array<i32>} : memref<32x5xf32, #tpu.memory_space<vmem>>, vector<32x5xf32>,
    return
  }
  func.func @transform_0(%arg0: i32) -> (i32, i32) {
    %c0_i32 = arith.constant 0 : i32
    %c0_i32_0 = arith.constant 0 : i32
    return %arg0, %c0_i32 : i32, i32
  }
  func.func @transform_1(%arg0: i32) -> (i32, i32) {
    %c0_i32 = arith.constant 0 : i32
    %c0_i32_0 = arith.constant 0 : i32
    %c0_i32_1 = arith.constant 0 : i32
    return %c0_i32, %c0_i32_0 : i32, i32
  }
  func.func @transform_2(%arg0: i32) -> (i32, i32) {
    %c0_i32 = arith.constant 0 : i32
    %c0_i32_0 = arith.constant 0 : i32
    %c0_i32_1 = arith.constant 0 : i32
    return %c0_i32, %c0_i32_0 : i32, i32
  }
  func.func @transform_3(%arg0: i32) -> (i32, i32) {
    %c0_i32 = arith.constant 0 : i32
    %c0_i32_0 = arith.constant 0 : i32
    %c0_i32_1 = arith.constant 0 : i32
    return %c0_i32, %c0_i32_0 : i32, i32
  }
  func.func @transform_4(%arg0: i32) -> (i32, i32) {
    %c0_i32 = arith.constant 0 : i32
    %c0_i32_0 = arith.constant 0 : i32
    %c0_i32_1 = arith.constant 0 : i32
    return %c0_i32, %c0_i32_0 : i32, i32
  }
  func.func @transform_5(%arg0: i32) -> (i32, i32) {
    %c0_i32 = arith.constant 0 : i32
    %c0_i32_0 = arith.constant 0 : i32
    return %arg0, %c0_i32 : i32, i32
  }
}

</mosaic_0001>

<bundles_post_ra>
// kernel: tpu_custom_call.1
= control target key start
LH: loop header
LB: loop body
LE: loop exit
PB: predicated region body
PF: predicated region fallthrough
CT: control target
= control target key end

     0   :  { %vm46_vm0 = vcmask 1041408   ;;  %vm420_vm1 = vmmov 1   ;;  %vm33_vm3 = vcmask 80896   ;;  %vm247_vm4 = vcmask 39936   ;;  %s536_s0 = inlined_call_operand.vmem [shape: f32[20,10], index: 0, kind: input, shape index: {}]   ;;  %s537_s1 = inlined_call_operand.vmem [shape: f32[10,128], index: 1, kind: input, shape index: {}]   ;;  %s538_s2 = inlined_call_operand.vmem [shape: f32[1,128], index: 2, kind: input, shape index: {}]   ;;  %s539_s3 = inlined_call_operand.vmem [shape: f32[128,5], index: 3, kind: input, shape index: {}]   ;;  %s540_s4 = inlined_call_operand.vmem [shape: f32[1,5], index: 4, kind: input, shape index: {}]   ;;  %s541_s5 = inlined_call_operand.vmem [shape: f32[20,5], index: 5, kind: output, shape index: {}]  }
   0x1   :  { %v24_v0 = vld [vmem:[%s537_s1] sm:$0xff]  ;;  %v25_v1 = vld [vmem:[%s537_s1 + $0x8] sm:$0x3]  ;;  %vm382_vm2 = vmpackc.low %vm46_vm0, %vm420_vm1 }
   0x2   :  { %v20_v2 = vld [vmem:[%s536_s0] sm:$0xff]  ;;  %v381_v3 = vpack.c.bf16 %v25_v1, %v24_v0  ;;  %v140_v5 = vld [vmem:[%s539_s3 + $0x8] sm:$0xff]  ;;  %v141_v7 = vld [vmem:[%s539_s3 + $0x10] sm:$0xff] }
   0x3   :  { %337 = vmatprep.mubr.msk.f32.mxu0 %vm33_vm3, %v20_v2  ;;  %v139_v4 = vld [vmem:[%s539_s3] sm:$0xff]  ;;  %v142_v8 = vld [vmem:[%s539_s3 + $0x18] sm:$0xff]  ;;  %v21_v9 = vld [vmem:[%s536_s0 + $0x8] sm:$0xff] }
   0x4   :  { %383 = vmatprep.subr.msk.bf16.mxu0 %vm382_vm2, %v381_v3  ;;  %v387_v6 = vpack.c.bf16 %v140_v5, %v139_v4  ;;  %v391_v10 = vpack.c.bf16 %v142_v8, %v141_v7  ;;  %v143_v11 = vld [vmem:[%s539_s3 + $0x20] sm:$0xff]  ;;  %v144_v12 = vld [vmem:[%s539_s3 + $0x28] sm:$0xff]  ;;  %v22_v13 = vld [vmem:[%s536_s0 + $0x10] sm:$0xff] }
   0x5   :  { %386 = vmatpush3.bf16.msk.msra.mxu0 %vm382_vm2, %v381_v3  ;;  %v395_v14 = vpack.c.bf16 %v144_v12, %v143_v11  ;;  %v23_v15 = vld [vmem:[%s536_s0 + $0x18] sm:$0xff]  ;;  %v145_v16 = vld [vmem:[%s539_s3 + $0x30] sm:$0xff]  ;;  %v147_v19 = vld [vmem:[%s539_s3 + $0x40] sm:$0xff] }
   0x6   :  { %388 = vmatprep.subr.bf16.mxu1 %v387_v6  ;;  %v146_v17 = vld [vmem:[%s539_s3 + $0x38] sm:$0xff]  ;;  %v148_v20 = vld [vmem:[%s539_s3 + $0x48] sm:$0xff]  ;;  %v149_v22 = vld [vmem:[%s539_s3 + $0x50] sm:$0xff] }
   0x7   :  { %390 = vmatpush3.bf16.msra.mxu1 %v387_v6  ;;  %v399_v18 = vpack.c.bf16 %v146_v17, %v145_v16  ;;  %v403_v21 = vpack.c.bf16 %v148_v20, %v147_v19  ;;  %v150_v23 = vld [vmem:[%s539_s3 + $0x58] sm:$0xff]  ;;  %v151_v25 = vld [vmem:[%s539_s3 + $0x60] sm:$0xff]  ;;  %v152_v26 = vld [vmem:[%s539_s3 + $0x68] sm:$0xff] }
   0x8   :  { %338 = vmatmul.mubr.msk.f32.vlgmr.msra.gmra.mrb[0].mxu0 %vm33_vm3, %v21_v9  ;;  %392 = vmatprep.subr.bf16.mxu1 %v391_v10  ;;  %v407_v24 = vpack.c.bf16 %v150_v23, %v149_v22  ;;  %v411_v27 = vpack.c.bf16 %v152_v26, %v151_v25  ;;  %v153_v28 = vld [vmem:[%s539_s3 + $0x70] sm:$0xff]  ;;  %v154_v29 = vld [vmem:[%s539_s3 + $0x78] sm:$0xff]  ;;  %v300_v31 = vld [vmem:[%s538_s2] ss:$0 sm:$0xff] }
   0x9   :  { %340 = vmatprep.mubr.msk.f32.mxu0 %vm33_vm3, %v22_v13  ;;  %v415_v30 = vpack.c.bf16 %v154_v29, %v153_v28  ;;  %v306_v44 = vld [vmem:[%s540_s4] ss:$0 sm:$0xff] }
   0xb   :  { %394 = vmatpush3.bf16.msra.mxu1 %v391_v10 }
   0xc   :  { %341 = vmatmul.mubr.msk.f32.gmra.mrb[2].mxu0 %vm33_vm3, %v23_v15  ;;  %396 = vmatprep.subr.bf16.mxu1 %v395_v14 }
   0xf   :  { %398 = vmatpush3.bf16.msra.mxu1 %v395_v14 }
  0x10   :  { %400 = vmatprep.subr.bf16.mxu1 %v399_v18 }
  0x13   :  { %402 = vmatpush3.bf16.msra.mxu1 %v399_v18 }
  0x14   :  { %404 = vmatprep.subr.bf16.mxu1 %v403_v21 }
  0x17   :  { %406 = vmatpush3.bf16.msra.mxu1 %v403_v21 }
  0x18   :  { %408 = vmatprep.subr.bf16.mxu1 %v407_v24 }
  0x1b   :  { %410 = vmatpush3.bf16.msra.mxu1 %v407_v24 }
  0x1c   :  { %412 = vmatprep.subr.bf16.mxu1 %v411_v27 }
  0x1f   :  { %414 = vmatpush3.bf16.msra.mxu1 %v411_v27 }
  0x20   :  { %416 = vmatprep.subr.bf16.mxu1 %v415_v30 }
  0x23   :  { %418 = vmatpush3.bf16.msra.mxu1 %v415_v30 }
  0xdb   :  { %v339_v32 = vpop.f32.mrb[0].mxu0 }
  0xdc   :  { %v122_v33 = vadd.f32 %v339_v32, %v300_v31  ;;  %v116_v34 = vpop.f32.mrb[1].mxu0 }
  0xdd   :  { %v117_v35 = vadd.f32 %v300_v31, %v116_v34 }
  0xde   :  { %v136_v38 = vmax.f32 %v122_v33, 0.0 }
  0xdf   :  { %v342_v36 = vpop.f32.mrb[2].mxu0  ;;  %v135_v37 = vmax.f32 %v117_v35, 0.0 }
  0xe0   :  { %v132_v39 = vadd.f32 %v342_v36, %v300_v31  ;;  %v126_v40 = vpop.f32.mrb[3].mxu0 }
  0xe1   :  { %v127_v41 = vadd.f32 %v300_v31, %v126_v40  ;;  %375 = vmatprep.mubr.f32.mxu1 %v135_v37 }
  0xe2   :  { %376 = vmatmul.mubr.f32.vlgmr.msra.gmra.mrb[0].mxu1 %v136_v38  ;;  %v138_v43 = vmax.f32 %v132_v39, 0.0 }
  0xe3   :  { %v137_v42 = vmax.f32 %v127_v41, 0.0 }
  0xe5   :  { %378 = vmatprep.mubr.f32.mxu1 %v137_v42 }
  0xe6   :  { %379 = vmatmul.mubr.f32.gmra.mrb[2].mxu1 %v138_v43 }
 0x1b5   :  { %v377_v45 = vpop.f32.mrb[0].mxu1 }
 0x1b6   :  { %v234_v46 = vadd.f32 %v377_v45, %v306_v44  ;;  %v228_v47 = vpop.f32.mrb[1].mxu1 }
 0x1b7   :  { %v229_v48 = vadd.f32 %v306_v44, %v228_v47 }
 0x1b8   :  { %249 = vst.msk [vmem:[#allocation2 + $0x8] sm:$0xff] %vm247_vm4, %v234_v46 }
 0x1b9   :  { %248 = vst.msk [vmem:[#allocation2] sm:$0xff] %vm247_vm4, %v229_v48  ;;  %v380_v49 = vpop.f32.mrb[2].mxu1 }
 0x1ba   :  { %v238_v50 = vpop.f32.mrb[3].mxu1 }
 0x1bb   :  { %v239_v51 = vadd.f32 %v306_v44, %v238_v50 }
 0x1bd   :  { %250 = vst.msk [vmem:[#allocation2 + $0x10] sm:$0xff] %vm247_vm4, %v239_v51 }
 0x1bf   :  { %v287_v52 = vld [vmem:[#allocation2 + $0x8] sm:$0xff] }
 0x1c0   :  { %288 = vst [vmem:[%s541_s5 + $0x8] sm:$0xff] %v287_v52  ;;  %v285_v53 = vld [vmem:[#allocation2] sm:$0xff] }
 0x1c1   :  { %286 = vst [vmem:[%s541_s5] sm:$0xff] %v285_v53 }
 0x1c4   :  { %v289_v54 = vld [vmem:[#allocation2 + $0x10] sm:$0xff] }
 0x1c5   :  { %290 = vst [vmem:[%s541_s5 + $0x10] sm:$0xff] %v289_v54 }

</bundles_post_ra>
